<compile_context>
chip_gen: v7x
topology: tpu7x:2x2x1
jax: 0.10.0
libtpu: 0.0.40
codegen_flags: <defaults>
</compile_context>

<pallas_src>
import functools

import jax
import jax.numpy as jnp
from jax.experimental import pallas as pl
from jax.experimental.pallas import tpu as pltpu


def _cdiv(a, b):
    return -(-a // b)


def _round_up(x, m):
    return _cdiv(x, m) * m


_VMEM_LIMIT = []


def _vmem_limit_bytes():
    """Scoped-VMEM limit derived from this generation's physical VMEM."""
    if not _VMEM_LIMIT:
        cap = 64 * 1024 * 1024                       # conservative fallback
        try:
            info = pltpu.get_tpu_info()
            cap = int(getattr(info, "vmem_capacity_bytes", cap) or cap)
        except Exception:
            pass
        _VMEM_LIMIT.append(int(min((cap * 3) // 4, 96 * 1024 * 1024)))
    return _VMEM_LIMIT[0]


# ---------------------------------------------------------------------------
# Pallas kernel: one (n, s, k) grid step of O[Cout, ts] += W[Cout, tk] @ P[tk, ts]
# accumulating directly into the VMEM-resident output block; bias, clamp(min)
# and the multiply by 1/divisor are applied in place at the last k step.
# ---------------------------------------------------------------------------
def _fused_matmul_kernel(w_ref, p_ref, b_ref, o_ref, *, min_value, inv_divisor):
    k = pl.program_id(2)
    prod = jnp.dot(w_ref[...], p_ref[...], preferred_element_type=jnp.float32)

    @pl.when(k == 0)
    def _store_first():
        o_ref[...] = prod

    @pl.when(k != 0)
    def _accumulate():
        o_ref[...] = o_ref[...] + prod

    @pl.when(k == pl.num_programs(2) - 1)
    def _epilogue():
        r = o_ref[...] + b_ref[...]                  # bias broadcast over lanes
        o_ref[...] = jnp.maximum(r, min_value) * inv_divisor


def _fused_matmul_clamp_div(w_mat, patches, bias, min_value, divisor,
                            tk_cap=1024, tile_budget=None):
    """clamp(w_mat @ patches + bias, min) * (1/divisor).

    w_mat: [Cout, K]   patches: [N, K, S]   bias: [Cout]   ->   [N, Cout, S]
    """
    N, K, S = patches.shape
    Cout = w_mat.shape[0]

    vmem_limit = _vmem_limit_bytes()
    if tile_budget is None:
        tile_budget = (vmem_limit * 3) // 5          # double-buffered block budget

    # --- contraction (K) tile: full K when it fits, else minimal 128-tiles ----
    if K <= tk_cap:
        tk, k_pad, num_k = K, K, 1                   # full-dim block: no padding
    else:
        num_k = _cdiv(K, tk_cap)
        tk = _round_up(_cdiv(K, num_k), 128)         # weights' last dim: 128-mult
        k_pad = num_k * tk

    # --- spatial (lane) tile: largest that fits the VMEM budget ---------------
    per_lane = (2 * tk + 2 * Cout) * 4               # patches + output, dbl-buffered
    max_ts = max(128, tile_budget // per_lane)
    if S <= max_ts:
        ts, s_pad, num_s = S, S, 1                   # full-dim block: no padding
    else:
        max_ts = (max_ts // 128) * 128
        num_s = _cdiv(S, max_ts)
        ts = _round_up(_cdiv(S, num_s), 128)         # minimal 128-aligned tile
        s_pad = num_s * ts

    if k_pad != K or s_pad != S:
        patches = jnp.pad(patches, ((0, 0), (0, k_pad - K), (0, s_pad - S)))
    if k_pad != K:
        w_mat = jnp.pad(w_mat, ((0, 0), (0, k_pad - K)))

    bias2d = bias.reshape(Cout, 1)
    kernel = functools.partial(_fused_matmul_kernel,
                               min_value=float(min_value),
                               inv_divisor=float(1.0 / divisor))

    out = pl.pallas_call(
        kernel,
        out_shape=jax.ShapeDtypeStruct((N, Cout, s_pad), jnp.float32),
        grid_spec=pltpu.PrefetchScalarGridSpec(
            num_scalar_prefetch=0,
            grid=(N, num_s, num_k),                  # reduction axis last
            in_specs=[
                pl.BlockSpec((Cout, tk), lambda n, s, k: (0, k)),          # W
                pl.BlockSpec((None, tk, ts), lambda n, s, k: (n, k, s)),   # P
                pl.BlockSpec((Cout, 1), lambda n, s, k: (0, 0)),           # bias
            ],
            out_specs=pl.BlockSpec((None, Cout, ts), lambda n, s, k: (n, 0, s)),
        ),
        compiler_params=pltpu.CompilerParams(
            dimension_semantics=("parallel", "parallel", "arbitrary"),
            vmem_limit_bytes=vmem_limit,
        ),
    )(w_mat, patches, bias2d)

    return out if s_pad == S else out[:, :, :S]


# ---------------------------------------------------------------------------
# Stride-phase geometry (all static Python ints).
# Output index o of phase phi ((o + padding) % stride == phi) is produced by
# kernel taps kk = phi + j*stride reading input index t - j, where
# t = (o + padding - phi) // stride and o = phi - padding + stride * t.
# ---------------------------------------------------------------------------
def _phase_geometry(phi, size_in, size_out, ksize, stride, padding):
    m = len(range(phi, ksize, stride))               # number of taps in this phase
    t_lo = max(0, -((phi - padding) // stride))      # smallest t with o >= 0
    t_hi = (size_out - 1 - phi + padding) // stride  # largest  t with o < size_out
    return dict(
        phi=phi, m=m, t_lo=t_lo, n=t_hi - t_lo + 1,
        pad_lo=max(0, (m - 1) - t_lo),               # left input halo needed
        pad_hi=max(0, t_hi - (size_in - 1)),         # right input halo needed
        o_start=phi - padding + stride * t_lo,
    )


@functools.partial(
    jax.jit,
    static_argnames=("stride", "padding", "min_value", "divisor", "debug_tiles"))
def conv_transpose3d_clamp_div(x, weight, bias, *, stride, padding,
                               min_value, divisor, debug_tiles=None):
    """y = clamp(conv_transpose3d(x, weight, bias), min_value) / divisor.

    x: [N, Cin, D, H, W], weight: [Cin, Cout, kD, kH, kW] (PyTorch layout),
    bias: [Cout]  ->  [N, Cout, Dout, Hout, Wout]
    """
    N, Cin, D, H, W = x.shape
    Cin_w, Cout, kD, kH, kW = weight.shape
    assert Cin == Cin_w
    s, p = stride, padding

    Dout = (D - 1) * s - 2 * p + kD
    Hout = (H - 1) * s - 2 * p + kH
    Wout = (W - 1) * s - 2 * p + kW

    x = x.astype(jnp.float32)
    weight = weight.astype(jnp.float32)
    bias = bias.astype(jnp.float32)

    gd_all = [_phase_geometry(phi, D, Dout, kD, s, p) for phi in range(s)]
    gh_all = [_phase_geometry(phi, H, Hout, kH, s, p) for phi in range(s)]
    gw_all = [_phase_geometry(phi, W, Wout, kW, s, p) for phi in range(s)]

    # One small halo pad of x shared by all phases (instead of padding the
    # large patches tensors).
    Ld = max(g["pad_lo"] for g in gd_all); Rd = max(g["pad_hi"] for g in gd_all)
    Lh = max(g["pad_lo"] for g in gh_all); Rh = max(g["pad_hi"] for g in gh_all)
    Lw = max(g["pad_lo"] for g in gw_all); Rw = max(g["pad_hi"] for g in gw_all)
    x_pad = jnp.pad(x, ((0, 0), (0, 0), (Ld, Rd), (Lh, Rh), (Lw, Rw)))

    tile_kwargs = {}
    if debug_tiles is not None:
        tile_kwargs = dict(tk_cap=debug_tiles[0], tile_budget=debug_tiles[1])

    phase_results = []                               # (output slices, values)
    for gd in gd_all:
        if gd["n"] <= 0:
            continue
        for gh in gh_all:
            if gh["n"] <= 0:
                continue
            for gw in gw_all:
                if gw["n"] <= 0:
                    continue
                nd, nh, nw = gd["n"], gh["n"], gw["n"]
                sl = (slice(None), slice(None),
                      slice(gd["o_start"], gd["o_start"] + s * nd, s),
                      slice(gh["o_start"], gh["o_start"] + s * nh, s),
                      slice(gw["o_start"], gw["o_start"] + s * nw, s))

                if gd["m"] == 0 or gh["m"] == 0 or gw["m"] == 0:
                    # No kernel taps hit this phase (stride > kernel): bias only.
                    fill = jnp.maximum(bias, min_value) / divisor
                    fill = jnp.broadcast_to(fill.reshape(1, Cout, 1, 1, 1),
                                            (N, Cout, nd, nh, nw))
                    phase_results.append((sl, fill))
                    continue

                # Per-phase shifted-window patches [N, Cin*md*mh*mw, S_phase],
                # K ordered (ci, jd, jh, jw), S already NCDHW-contiguous.
                slabs = []
                for jd in range(gd["m"]):
                    d0 = gd["t_lo"] - jd + Ld
                    for jh in range(gh["m"]):
                        h0 = gh["t_lo"] - jh + Lh
                        for jw in range(gw["m"]):
                            w0 = gw["t_lo"] - jw + Lw
                            slabs.append(x_pad[:, :, d0:d0 + nd,
                                               h0:h0 + nh, w0:w0 + nw])
                stacked = jnp.stack(slabs, axis=2)   # [N, Cin, J, nd, nh, nw]
                patches = stacked.reshape(N, Cin * len(slabs), nd * nh * nw)

                # Per-phase weight matrix [Cout, Cin*md*mh*mw] (no kernel flip:
                # tap j of phase phi is weight[..., phi + j*stride, ...]).
                w_sub = weight[:, :, gd["phi"]::s, gh["phi"]::s, gw["phi"]::s]
                w_mat = jnp.transpose(w_sub, (1, 0, 2, 3, 4)).reshape(Cout, -1)

                res = _fused_matmul_clamp_div(w_mat, patches, bias,
                                              min_value, divisor, **tile_kwargs)
                phase_results.append((sl, res.reshape(N, Cout, nd, nh, nw)))

    if s == 1:                                       # single phase covers all
        return phase_results[0][1]

    # Interleave the stride^3 phase sub-grids back into NCDHW.
    y = jnp.zeros((N, Cout, Dout, Hout, Wout), jnp.float32)
    for sl, val in phase_results:
        y = y.at[sl].set(val)
    return y


if __name__ == "__main__":
    def reference(x, weight, bias, stride, padding, min_value, divisor):
        Cin, Cout, k = weight.shape[0], weight.shape[1], weight.shape[2]
        dn = jax.lax.conv_dimension_numbers(
            x.shape, (Cout, Cin, k, k, k), ("NCDHW", "OIDHW", "NCDHW"))
        w_ref = jnp.transpose(weight[:, :, ::-1, ::-1, ::-1], (1, 0, 2, 3, 4))
        pad_amt = k - 1 - padding
        ref = jax.lax.conv_general_dilated(
            x, w_ref, window_strides=(1, 1, 1),
            padding=[(pad_amt, pad_amt)] * 3,
            lhs_dilation=(stride, stride, stride),
            dimension_numbers=dn,
            precision=jax.lax.Precision.HIGHEST)
        ref = ref + bias.reshape(1, Cout, 1, 1, 1)
        return jnp.maximum(ref, min_value) / divisor

    key = jax.random.PRNGKey(0)
    min_value, divisor = -1.0, 2.0
    configs = [
        # (N, Cin, Cout, spatial, kernel, stride, padding, debug_tiles)
        (2, 4, 8, 6, 3, 2, 1, None),                    # tiny, stride 2
        (2, 24, 16, 10, 3, 2, 1, None),                 # bigger phases, one tile
        (2, 8, 8, 6, 3, 1, 1, None),                    # stride 1 (single phase)
        (2, 24, 16, 10, 3, 2, 1, (128, 256 * 1024)),    # force K/S grid tiling
    ]

    for (N, Cin, Cout, Dsp, ksz, stride, padding, dbg) in configs:
        key, kx, kw_, kb = jax.random.split(key, 4)
        x = jax.random.normal(kx, (N, Cin, Dsp, Dsp, Dsp), dtype=jnp.float32)
        fan_in = Cin * ksz ** 3
        bound = 1.0 / (fan_in ** 0.5)
        weight = jax.random.uniform(
            kw_, (Cin, Cout, ksz, ksz, ksz),
            minval=-bound, maxval=bound, dtype=jnp.float32)
        bias = jax.random.uniform(kb, (Cout,), minval=-bound, maxval=bound,
                                  dtype=jnp.float32)

        out = conv_transpose3d_clamp_div(
            x, weight, bias, stride=stride, padding=padding,
            min_value=min_value, divisor=divisor, debug_tiles=dbg)
        out = jax.block_until_ready(out)

        ref = reference(x, weight, bias, stride, padding, min_value, divisor)
        assert out.shape == ref.shape, (out.shape, ref.shape)
        err = float(jnp.max(jnp.abs(out - ref)))
        assert err < 5e-4, (err, (N, Cin, Cout, Dsp, ksz, stride, padding))

    print("KERNEL_OK")
</pallas_src>

<mosaic_0001>
module attributes {stable_mosaic.version = 11 : i64} {
  func.func @_fused_matmul_kernel(%arg0: i32, %arg1: i32, %arg2: i32, %arg3: memref<8x32xf32, #tpu.memory_space<vmem>>, %arg4: memref<1x32x125xf32, #tpu.memory_space<vmem>>, %arg5: memref<8x1xf32, #tpu.memory_space<vmem>>, %arg6: memref<1x8x125xf32, #tpu.memory_space<vmem>>) attributes {dimension_semantics = [#tpu.dimension_semantics<parallel>, #tpu.dimension_semantics<parallel>, #tpu.dimension_semantics<arbitrary>], iteration_bounds = array<i64: 2, 1, 1>, scalar_prefetch = 0 : i64, scratch_operands = 0 : i64, tpu.core_type = #tpu.core_type<tc>, window_params = [{transform_indices = @transform_0, window_bounds = array<i64: 8, 32>}, {transform_indices = @transform_1, window_bounds = array<i64: 1, 32, 125>}, {pipeline_mode = #tpu.pipeline_mode<synchronous>, transform_indices = @transform_2, window_bounds = array<i64: 8, 1>}, {transform_indices = @transform_3, window_bounds = array<i64: 1, 8, 125>}]} {
    %c0 = arith.constant 0 : index
    %c0_0 = arith.constant 0 : index
    %0 = vector.load %arg3[%c0, %c0_0] : memref<8x32xf32, #tpu.memory_space<vmem>>, vector<8x32xf32>
    %c0_1 = arith.constant 0 : index
    %c0_2 = arith.constant 0 : index
    %c0_3 = arith.constant 0 : index
    %1 = vector.load %arg4[%c0_1, %c0_2, %c0_3] : memref<1x32x125xf32, #tpu.memory_space<vmem>>, vector<1x32x125xf32>
    %2 = vector.shape_cast %1 : vector<1x32x125xf32> to vector<32x125xf32>
    %cst = arith.constant dense<0.000000e+00> : vector<8x125xf32>
    %3 = tpu.matmul %0, %2, %cst {dimension_numbers = #tpu.dot_dimension_numbers<[1], [0], [0], [1], [0, 0, 1, 1], [], []>} : vector<8x32xf32>, vector<32x125xf32>, vector<8x125xf32> -> vector<8x125xf32>
    %c0_i32 = arith.constant 0 : i32
    %4 = arith.cmpi eq, %arg2, %c0_i32 : i32
    %5 = arith.extui %4 : i1 to i32
    %c0_i32_4 = arith.constant 0 : i32
    %6 = arith.cmpi ne, %5, %c0_i32_4 : i32
    scf.if %6 {
      %c0_9 = arith.constant 0 : index
      %c0_10 = arith.constant 0 : index
      %c0_11 = arith.constant 0 : index
      %13 = vector.load %arg6[%c0_9, %c0_10, %c0_11] : memref<1x8x125xf32, #tpu.memory_space<vmem>>, vector<1x8x125xf32>
      %14 = vector.shape_cast %13 : vector<1x8x125xf32> to vector<8x125xf32>
      %15 = vector.shape_cast %3 : vector<8x125xf32> to vector<1x8x125xf32>
      tpu.vector_store %arg6[%c0_9, %c0_10, %c0_11], %15 {strides = array<i32>} : memref<1x8x125xf32, #tpu.memory_space<vmem>>, vector<1x8x125xf32>,
    } else {
    }
    %c0_i32_5 = arith.constant 0 : i32
    %7 = arith.cmpi ne, %arg2, %c0_i32_5 : i32
    %8 = arith.extui %7 : i1 to i32
    %c0_i32_6 = arith.constant 0 : i32
    %9 = arith.cmpi ne, %8, %c0_i32_6 : i32
    scf.if %9 {
      %c0_9 = arith.constant 0 : index
      %c0_10 = arith.constant 0 : index
      %c0_11 = arith.constant 0 : index
      %13 = vector.load %arg6[%c0_9, %c0_10, %c0_11] : memref<1x8x125xf32, #tpu.memory_space<vmem>>, vector<1x8x125xf32>
      %14 = vector.shape_cast %13 : vector<1x8x125xf32> to vector<8x125xf32>
      %15 = arith.addf %14, %3 : vector<8x125xf32>
      %c0_12 = arith.constant 0 : index
      %c0_13 = arith.constant 0 : index
      %c0_14 = arith.constant 0 : index
      %16 = vector.load %arg6[%c0_12, %c0_13, %c0_14] : memref<1x8x125xf32, #tpu.memory_space<vmem>>, vector<1x8x125xf32>
      %17 = vector.shape_cast %16 : vector<1x8x125xf32> to vector<8x125xf32>
      %18 = vector.shape_cast %15 : vector<8x125xf32> to vector<1x8x125xf32>
      tpu.vector_store %arg6[%c0_12, %c0_13, %c0_14], %18 {strides = array<i32>} : memref<1x8x125xf32, #tpu.memory_space<vmem>>, vector<1x8x125xf32>,
    } else {
    }
    %c0_i32_7 = arith.constant 0 : i32
    %10 = arith.cmpi eq, %arg2, %c0_i32_7 : i32
    %11 = arith.extui %10 : i1 to i32
    %c0_i32_8 = arith.constant 0 : i32
    %12 = arith.cmpi ne, %11, %c0_i32_8 : i32
    scf.if %12 {
      %c0_9 = arith.constant 0 : index
      %c0_10 = arith.constant 0 : index
      %c0_11 = arith.constant 0 : index
      %13 = vector.load %arg6[%c0_9, %c0_10, %c0_11] : memref<1x8x125xf32, #tpu.memory_space<vmem>>, vector<1x8x125xf32>
      %14 = vector.shape_cast %13 : vector<1x8x125xf32> to vector<8x125xf32>
      %c0_12 = arith.constant 0 : index
      %c0_13 = arith.constant 0 : index
      %15 = vector.load %arg5[%c0_12, %c0_13] : memref<8x1xf32, #tpu.memory_space<vmem>>, vector<8x1xf32>
      %16 = vector.broadcast %15 : vector<8x1xf32> to vector<8x125xf32>
      %17 = arith.addf %14, %16 : vector<8x125xf32>
      %cst_14 = arith.constant -1.000000e+00 : f32
      %18 = vector.broadcast %cst_14 : f32 to vector<8x125xf32>
      %19 = arith.maximumf %17, %18 : vector<8x125xf32>
      %cst_15 = arith.constant 5.000000e-01 : f32
      %20 = vector.broadcast %cst_15 : f32 to vector<8x125xf32>
      %21 = arith.mulf %19, %20 : vector<8x125xf32>
      %c0_16 = arith.constant 0 : index
      %c0_17 = arith.constant 0 : index
      %c0_18 = arith.constant 0 : index
      %22 = vector.load %arg6[%c0_16, %c0_17, %c0_18] : memref<1x8x125xf32, #tpu.memory_space<vmem>>, vector<1x8x125xf32>
      %23 = vector.shape_cast %22 : vector<1x8x125xf32> to vector<8x125xf32>
      %24 = vector.shape_cast %21 : vector<8x125xf32> to vector<1x8x125xf32>
      tpu.vector_store %arg6[%c0_16, %c0_17, %c0_18], %24 {strides = array<i32>} : memref<1x8x125xf32, #tpu.memory_space<vmem>>, vector<1x8x125xf32>,
    } else {
    }
    return
  }
  func.func @transform_0(%arg0: i32, %arg1: i32, %arg2: i32) -> (i32, i32) {
    %c0_i32 = arith.constant 0 : i32
    %c0_i32_0 = arith.constant 0 : i32
    return %c0_i32, %arg2 : i32, i32
  }
  func.func @transform_1(%arg0: i32, %arg1: i32, %arg2: i32) -> (i32, i32, i32) {
    %c0_i32 = arith.constant 0 : i32
    return %arg0, %arg2, %arg1 : i32, i32, i32
  }
  func.func @transform_2(%arg0: i32, %arg1: i32, %arg2: i32) -> (i32, i32) {
    %c0_i32 = arith.constant 0 : i32
    %c0_i32_0 = arith.constant 0 : i32
    %c0_i32_1 = arith.constant 0 : i32
    return %c0_i32, %c0_i32_0 : i32, i32
  }
  func.func @transform_3(%arg0: i32, %arg1: i32, %arg2: i32) -> (i32, i32, i32) {
    %c0_i32 = arith.constant 0 : i32
    %c0_i32_0 = arith.constant 0 : i32
    return %arg0, %c0_i32, %arg1 : i32, i32, i32
  }
}

module attributes {stable_mosaic.version = 11 : i64} {
  func.func @_fused_matmul_kernel(%arg0: i32, %arg1: i32, %arg2: i32, %arg3: memref<8x16xf32, #tpu.memory_space<vmem>>, %arg4: memref<1x16x150xf32, #tpu.memory_space<vmem>>, %arg5: memref<8x1xf32, #tpu.memory_space<vmem>>, %arg6: memref<1x8x150xf32, #tpu.memory_space<vmem>>) attributes {dimension_semantics = [#tpu.dimension_semantics<parallel>, #tpu.dimension_semantics<parallel>, #tpu.dimension_semantics<arbitrary>], iteration_bounds = array<i64: 2, 1, 1>, scalar_prefetch = 0 : i64, scratch_operands = 0 : i64, tpu.core_type = #tpu.core_type<tc>, window_params = [{transform_indices = @transform_0, window_bounds = array<i64: 8, 16>}, {transform_indices = @transform_1, window_bounds = array<i64: 1, 16, 150>}, {pipeline_mode = #tpu.pipeline_mode<synchronous>, transform_indices = @transform_2, window_bounds = array<i64: 8, 1>}, {transform_indices = @transform_3, window_bounds = array<i64: 1, 8, 150>}]} {
    %c0 = arith.constant 0 : index
    %c0_0 = arith.constant 0 : index
    %0 = vector.load %arg3[%c0, %c0_0] : memref<8x16xf32, #tpu.memory_space<vmem>>, vector<8x16xf32>
    %c0_1 = arith.constant 0 : index
    %c0_2 = arith.constant 0 : index
    %c0_3 = arith.constant 0 : index
    %1 = vector.load %arg4[%c0_1, %c0_2, %c0_3] : memref<1x16x150xf32, #tpu.memory_space<vmem>>, vector<1x16x150xf32>
    %2 = vector.shape_cast %1 : vector<1x16x150xf32> to vector<16x150xf32>
    %cst = arith.constant dense<0.000000e+00> : vector<8x150xf32>
    %3 = tpu.matmul %0, %2, %cst {dimension_numbers = #tpu.dot_dimension_numbers<[1], [0], [0], [1], [0, 0, 1, 1], [], []>} : vector<8x16xf32>, vector<16x150xf32>, vector<8x150xf32> -> vector<8x150xf32>
    %c0_i32 = arith.constant 0 : i32
    %4 = arith.cmpi eq, %arg2, %c0_i32 : i32
    %5 = arith.extui %4 : i1 to i32
    %c0_i32_4 = arith.constant 0 : i32
    %6 = arith.cmpi ne, %5, %c0_i32_4 : i32
    scf.if %6 {
      %c0_9 = arith.constant 0 : index
      %c0_10 = arith.constant 0 : index
      %c0_11 = arith.constant 0 : index
      %13 = vector.load %arg6[%c0_9, %c0_10, %c0_11] : memref<1x8x150xf32, #tpu.memory_space<vmem>>, vector<1x8x150xf32>
      %14 = vector.shape_cast %13 : vector<1x8x150xf32> to vector<8x150xf32>
      %15 = vector.shape_cast %3 : vector<8x150xf32> to vector<1x8x150xf32>
      tpu.vector_store %arg6[%c0_9, %c0_10, %c0_11], %15 {strides = array<i32>} : memref<1x8x150xf32, #tpu.memory_space<vmem>>, vector<1x8x150xf32>,
    } else {
    }
    %c0_i32_5 = arith.constant 0 : i32
    %7 = arith.cmpi ne, %arg2, %c0_i32_5 : i32
    %8 = arith.extui %7 : i1 to i32
    %c0_i32_6 = arith.constant 0 : i32
    %9 = arith.cmpi ne, %8, %c0_i32_6 : i32
    scf.if %9 {
      %c0_9 = arith.constant 0 : index
      %c0_10 = arith.constant 0 : index
      %c0_11 = arith.constant 0 : index
      %13 = vector.load %arg6[%c0_9, %c0_10, %c0_11] : memref<1x8x150xf32, #tpu.memory_space<vmem>>, vector<1x8x150xf32>
      %14 = vector.shape_cast %13 : vector<1x8x150xf32> to vector<8x150xf32>
      %15 = arith.addf %14, %3 : vector<8x150xf32>
      %c0_12 = arith.constant 0 : index
      %c0_13 = arith.constant 0 : index
      %c0_14 = arith.constant 0 : index
      %16 = vector.load %arg6[%c0_12, %c0_13, %c0_14] : memref<1x8x150xf32, #tpu.memory_space<vmem>>, vector<1x8x150xf32>
      %17 = vector.shape_cast %16 : vector<1x8x150xf32> to vector<8x150xf32>
      %18 = vector.shape_cast %15 : vector<8x150xf32> to vector<1x8x150xf32>
      tpu.vector_store %arg6[%c0_12, %c0_13, %c0_14], %18 {strides = array<i32>} : memref<1x8x150xf32, #tpu.memory_space<vmem>>, vector<1x8x150xf32>,
    } else {
    }
    %c0_i32_7 = arith.constant 0 : i32
    %10 = arith.cmpi eq, %arg2, %c0_i32_7 : i32
    %11 = arith.extui %10 : i1 to i32
    %c0_i32_8 = arith.constant 0 : i32
    %12 = arith.cmpi ne, %11, %c0_i32_8 : i32
    scf.if %12 {
      %c0_9 = arith.constant 0 : index
      %c0_10 = arith.constant 0 : index
      %c0_11 = arith.constant 0 : index
      %13 = vector.load %arg6[%c0_9, %c0_10, %c0_11] : memref<1x8x150xf32, #tpu.memory_space<vmem>>, vector<1x8x150xf32>
      %14 = vector.shape_cast %13 : vector<1x8x150xf32> to vector<8x150xf32>
      %c0_12 = arith.constant 0 : index
      %c0_13 = arith.constant 0 : index
      %15 = vector.load %arg5[%c0_12, %c0_13] : memref<8x1xf32, #tpu.memory_space<vmem>>, vector<8x1xf32>
      %16 = vector.broadcast %15 : vector<8x1xf32> to vector<8x150xf32>
      %17 = arith.addf %14, %16 : vector<8x150xf32>
      %cst_14 = arith.constant -1.000000e+00 : f32
      %18 = vector.broadcast %cst_14 : f32 to vector<8x150xf32>
      %19 = arith.maximumf %17, %18 : vector<8x150xf32>
      %cst_15 = arith.constant 5.000000e-01 : f32
      %20 = vector.broadcast %cst_15 : f32 to vector<8x150xf32>
      %21 = arith.mulf %19, %20 : vector<8x150xf32>
      %c0_16 = arith.constant 0 : index
      %c0_17 = arith.constant 0 : index
      %c0_18 = arith.constant 0 : index
      %22 = vector.load %arg6[%c0_16, %c0_17, %c0_18] : memref<1x8x150xf32, #tpu.memory_space<vmem>>, vector<1x8x150xf32>
      %23 = vector.shape_cast %22 : vector<1x8x150xf32> to vector<8x150xf32>
      %24 = vector.shape_cast %21 : vector<8x150xf32> to vector<1x8x150xf32>
      tpu.vector_store %arg6[%c0_16, %c0_17, %c0_18], %24 {strides = array<i32>} : memref<1x8x150xf32, #tpu.memory_space<vmem>>, vector<1x8x150xf32>,
    } else {
    }
    return
  }
  func.func @transform_0(%arg0: i32, %arg1: i32, %arg2: i32) -> (i32, i32) {
    %c0_i32 = arith.constant 0 : i32
    %c0_i32_0 = arith.constant 0 : i32
    return %c0_i32, %arg2 : i32, i32
  }
  func.func @transform_1(%arg0: i32, %arg1: i32, %arg2: i32) -> (i32, i32, i32) {
    %c0_i32 = arith.constant 0 : i32
    return %arg0, %arg2, %arg1 : i32, i32, i32
  }
  func.func @transform_2(%arg0: i32, %arg1: i32, %arg2: i32) -> (i32, i32) {
    %c0_i32 = arith.constant 0 : i32
    %c0_i32_0 = arith.constant 0 : i32
    %c0_i32_1 = arith.constant 0 : i32
    return %c0_i32, %c0_i32_0 : i32, i32
  }
  func.func @transform_3(%arg0: i32, %arg1: i32, %arg2: i32) -> (i32, i32, i32) {
    %c0_i32 = arith.constant 0 : i32
    %c0_i32_0 = arith.constant 0 : i32
    return %arg0, %c0_i32, %arg1 : i32, i32, i32
  }
}

module attributes {stable_mosaic.version = 11 : i64} {
  func.func @_fused_matmul_kernel(%arg0: i32, %arg1: i32, %arg2: i32, %arg3: memref<8x8xf32, #tpu.memory_space<vmem>>, %arg4: memref<1x8x180xf32, #tpu.memory_space<vmem>>, %arg5: memref<8x1xf32, #tpu.memory_space<vmem>>, %arg6: memref<1x8x180xf32, #tpu.memory_space<vmem>>) attributes {dimension_semantics = [#tpu.dimension_semantics<parallel>, #tpu.dimension_semantics<parallel>, #tpu.dimension_semantics<arbitrary>], iteration_bounds = array<i64: 2, 1, 1>, scalar_prefetch = 0 : i64, scratch_operands = 0 : i64, tpu.core_type = #tpu.core_type<tc>, window_params = [{transform_indices = @transform_0, window_bounds = array<i64: 8, 8>}, {transform_indices = @transform_1, window_bounds = array<i64: 1, 8, 180>}, {pipeline_mode = #tpu.pipeline_mode<synchronous>, transform_indices = @transform_2, window_bounds = array<i64: 8, 1>}, {transform_indices = @transform_3, window_bounds = array<i64: 1, 8, 180>}]} {
    %c0 = arith.constant 0 : index
    %c0_0 = arith.constant 0 : index
    %0 = vector.load %arg3[%c0, %c0_0] : memref<8x8xf32, #tpu.memory_space<vmem>>, vector<8x8xf32>
    %c0_1 = arith.constant 0 : index
    %c0_2 = arith.constant 0 : index
    %c0_3 = arith.constant 0 : index
    %1 = vector.load %arg4[%c0_1, %c0_2, %c0_3] : memref<1x8x180xf32, #tpu.memory_space<vmem>>, vector<1x8x180xf32>
    %2 = vector.shape_cast %1 : vector<1x8x180xf32> to vector<8x180xf32>
    %cst = arith.constant dense<0.000000e+00> : vector<8x180xf32>
    %3 = tpu.matmul %0, %2, %cst {dimension_numbers = #tpu.dot_dimension_numbers<[1], [0], [0], [1], [0, 0, 1, 1], [], []>} : vector<8x8xf32>, vector<8x180xf32>, vector<8x180xf32> -> vector<8x180xf32>
    %c0_i32 = arith.constant 0 : i32
    %4 = arith.cmpi eq, %arg2, %c0_i32 : i32
    %5 = arith.extui %4 : i1 to i32
    %c0_i32_4 = arith.constant 0 : i32
    %6 = arith.cmpi ne, %5, %c0_i32_4 : i32
    scf.if %6 {
      %c0_9 = arith.constant 0 : index
      %c0_10 = arith.constant 0 : index
      %c0_11 = arith.constant 0 : index
      %13 = vector.load %arg6[%c0_9, %c0_10, %c0_11] : memref<1x8x180xf32, #tpu.memory_space<vmem>>, vector<1x8x180xf32>
      %14 = vector.shape_cast %13 : vector<1x8x180xf32> to vector<8x180xf32>
      %15 = vector.shape_cast %3 : vector<8x180xf32> to vector<1x8x180xf32>
      tpu.vector_store %arg6[%c0_9, %c0_10, %c0_11], %15 {strides = array<i32>} : memref<1x8x180xf32, #tpu.memory_space<vmem>>, vector<1x8x180xf32>,
    } else {
    }
    %c0_i32_5 = arith.constant 0 : i32
    %7 = arith.cmpi ne, %arg2, %c0_i32_5 : i32
    %8 = arith.extui %7 : i1 to i32
    %c0_i32_6 = arith.constant 0 : i32
    %9 = arith.cmpi ne, %8, %c0_i32_6 : i32
    scf.if %9 {
      %c0_9 = arith.constant 0 : index
      %c0_10 = arith.constant 0 : index
      %c0_11 = arith.constant 0 : index
      %13 = vector.load %arg6[%c0_9, %c0_10, %c0_11] : memref<1x8x180xf32, #tpu.memory_space<vmem>>, vector<1x8x180xf32>
      %14 = vector.shape_cast %13 : vector<1x8x180xf32> to vector<8x180xf32>
      %15 = arith.addf %14, %3 : vector<8x180xf32>
      %c0_12 = arith.constant 0 : index
      %c0_13 = arith.constant 0 : index
      %c0_14 = arith.constant 0 : index
      %16 = vector.load %arg6[%c0_12, %c0_13, %c0_14] : memref<1x8x180xf32, #tpu.memory_space<vmem>>, vector<1x8x180xf32>
      %17 = vector.shape_cast %16 : vector<1x8x180xf32> to vector<8x180xf32>
      %18 = vector.shape_cast %15 : vector<8x180xf32> to vector<1x8x180xf32>
      tpu.vector_store %arg6[%c0_12, %c0_13, %c0_14], %18 {strides = array<i32>} : memref<1x8x180xf32, #tpu.memory_space<vmem>>, vector<1x8x180xf32>,
    } else {
    }
    %c0_i32_7 = arith.constant 0 : i32
    %10 = arith.cmpi eq, %arg2, %c0_i32_7 : i32
    %11 = arith.extui %10 : i1 to i32
    %c0_i32_8 = arith.constant 0 : i32
    %12 = arith.cmpi ne, %11, %c0_i32_8 : i32
    scf.if %12 {
      %c0_9 = arith.constant 0 : index
      %c0_10 = arith.constant 0 : index
      %c0_11 = arith.constant 0 : index
      %13 = vector.load %arg6[%c0_9, %c0_10, %c0_11] : memref<1x8x180xf32, #tpu.memory_space<vmem>>, vector<1x8x180xf32>
      %14 = vector.shape_cast %13 : vector<1x8x180xf32> to vector<8x180xf32>
      %c0_12 = arith.constant 0 : index
      %c0_13 = arith.constant 0 : index
      %15 = vector.load %arg5[%c0_12, %c0_13] : memref<8x1xf32, #tpu.memory_space<vmem>>, vector<8x1xf32>
      %16 = vector.broadcast %15 : vector<8x1xf32> to vector<8x180xf32>
      %17 = arith.addf %14, %16 : vector<8x180xf32>
      %cst_14 = arith.constant -1.000000e+00 : f32
      %18 = vector.broadcast %cst_14 : f32 to vector<8x180xf32>
      %19 = arith.maximumf %17, %18 : vector<8x180xf32>
      %cst_15 = arith.constant 5.000000e-01 : f32
      %20 = vector.broadcast %cst_15 : f32 to vector<8x180xf32>
      %21 = arith.mulf %19, %20 : vector<8x180xf32>
      %c0_16 = arith.constant 0 : index
      %c0_17 = arith.constant 0 : index
      %c0_18 = arith.constant 0 : index
      %22 = vector.load %arg6[%c0_16, %c0_17, %c0_18] : memref<1x8x180xf32, #tpu.memory_space<vmem>>, vector<1x8x180xf32>
      %23 = vector.shape_cast %22 : vector<1x8x180xf32> to vector<8x180xf32>
      %24 = vector.shape_cast %21 : vector<8x180xf32> to vector<1x8x180xf32>
      tpu.vector_store %arg6[%c0_16, %c0_17, %c0_18], %24 {strides = array<i32>} : memref<1x8x180xf32, #tpu.memory_space<vmem>>, vector<1x8x180xf32>,
    } else {
    }
    return
  }
  func.func @transform_0(%arg0: i32, %arg1: i32, %arg2: i32) -> (i32, i32) {
    %c0_i32 = arith.constant 0 : i32
    %c0_i32_0 = arith.constant 0 : i32
    return %c0_i32, %arg2 : i32, i32
  }
  func.func @transform_1(%arg0: i32, %arg1: i32, %arg2: i32) -> (i32, i32, i32) {
    %c0_i32 = arith.constant 0 : i32
    return %arg0, %arg2, %arg1 : i32, i32, i32
  }
  func.func @transform_2(%arg0: i32, %arg1: i32, %arg2: i32) -> (i32, i32) {
    %c0_i32 = arith.constant 0 : i32
    %c0_i32_0 = arith.constant 0 : i32
    %c0_i32_1 = arith.constant 0 : i32
    return %c0_i32, %c0_i32_0 : i32, i32
  }
  func.func @transform_3(%arg0: i32, %arg1: i32, %arg2: i32) -> (i32, i32, i32) {
    %c0_i32 = arith.constant 0 : i32
    %c0_i32_0 = arith.constant 0 : i32
    return %arg0, %c0_i32, %arg1 : i32, i32, i32
  }
}

module attributes {stable_mosaic.version = 11 : i64} {
  func.func @_fused_matmul_kernel(%arg0: i32, %arg1: i32, %arg2: i32, %arg3: memref<8x4xf32, #tpu.memory_space<vmem>>, %arg4: memref<1x4x216xf32, #tpu.memory_space<vmem>>, %arg5: memref<8x1xf32, #tpu.memory_space<vmem>>, %arg6: memref<1x8x216xf32, #tpu.memory_space<vmem>>) attributes {dimension_semantics = [#tpu.dimension_semantics<parallel>, #tpu.dimension_semantics<parallel>, #tpu.dimension_semantics<arbitrary>], iteration_bounds = array<i64: 2, 1, 1>, scalar_prefetch = 0 : i64, scratch_operands = 0 : i64, tpu.core_type = #tpu.core_type<tc>, window_params = [{transform_indices = @transform_0, window_bounds = array<i64: 8, 4>}, {transform_indices = @transform_1, window_bounds = array<i64: 1, 4, 216>}, {pipeline_mode = #tpu.pipeline_mode<synchronous>, transform_indices = @transform_2, window_bounds = array<i64: 8, 1>}, {transform_indices = @transform_3, window_bounds = array<i64: 1, 8, 216>}]} {
    %c0 = arith.constant 0 : index
    %c0_0 = arith.constant 0 : index
    %0 = vector.load %arg3[%c0, %c0_0] : memref<8x4xf32, #tpu.memory_space<vmem>>, vector<8x4xf32>
    %c0_1 = arith.constant 0 : index
    %c0_2 = arith.constant 0 : index
    %c0_3 = arith.constant 0 : index
    %1 = vector.load %arg4[%c0_1, %c0_2, %c0_3] : memref<1x4x216xf32, #tpu.memory_space<vmem>>, vector<1x4x216xf32>
    %2 = vector.shape_cast %1 : vector<1x4x216xf32> to vector<4x216xf32>
    %cst = arith.constant dense<0.000000e+00> : vector<8x216xf32>
    %3 = tpu.matmul %0, %2, %cst {dimension_numbers = #tpu.dot_dimension_numbers<[1], [0], [0], [1], [0, 0, 1, 1], [], []>} : vector<8x4xf32>, vector<4x216xf32>, vector<8x216xf32> -> vector<8x216xf32>
    %c0_i32 = arith.constant 0 : i32
    %4 = arith.cmpi eq, %arg2, %c0_i32 : i32
    %5 = arith.extui %4 : i1 to i32
    %c0_i32_4 = arith.constant 0 : i32
    %6 = arith.cmpi ne, %5, %c0_i32_4 : i32
    scf.if %6 {
      %c0_9 = arith.constant 0 : index
      %c0_10 = arith.constant 0 : index
      %c0_11 = arith.constant 0 : index
      %13 = vector.load %arg6[%c0_9, %c0_10, %c0_11] : memref<1x8x216xf32, #tpu.memory_space<vmem>>, vector<1x8x216xf32>
      %14 = vector.shape_cast %13 : vector<1x8x216xf32> to vector<8x216xf32>
      %15 = vector.shape_cast %3 : vector<8x216xf32> to vector<1x8x216xf32>
      tpu.vector_store %arg6[%c0_9, %c0_10, %c0_11], %15 {strides = array<i32>} : memref<1x8x216xf32, #tpu.memory_space<vmem>>, vector<1x8x216xf32>,
    } else {
    }
    %c0_i32_5 = arith.constant 0 : i32
    %7 = arith.cmpi ne, %arg2, %c0_i32_5 : i32
    %8 = arith.extui %7 : i1 to i32
    %c0_i32_6 = arith.constant 0 : i32
    %9 = arith.cmpi ne, %8, %c0_i32_6 : i32
    scf.if %9 {
      %c0_9 = arith.constant 0 : index
      %c0_10 = arith.constant 0 : index
      %c0_11 = arith.constant 0 : index
      %13 = vector.load %arg6[%c0_9, %c0_10, %c0_11] : memref<1x8x216xf32, #tpu.memory_space<vmem>>, vector<1x8x216xf32>
      %14 = vector.shape_cast %13 : vector<1x8x216xf32> to vector<8x216xf32>
      %15 = arith.addf %14, %3 : vector<8x216xf32>
      %c0_12 = arith.constant 0 : index
      %c0_13 = arith.constant 0 : index
      %c0_14 = arith.constant 0 : index
      %16 = vector.load %arg6[%c0_12, %c0_13, %c0_14] : memref<1x8x216xf32, #tpu.memory_space<vmem>>, vector<1x8x216xf32>
      %17 = vector.shape_cast %16 : vector<1x8x216xf32> to vector<8x216xf32>
      %18 = vector.shape_cast %15 : vector<8x216xf32> to vector<1x8x216xf32>
      tpu.vector_store %arg6[%c0_12, %c0_13, %c0_14], %18 {strides = array<i32>} : memref<1x8x216xf32, #tpu.memory_space<vmem>>, vector<1x8x216xf32>,
    } else {
    }
    %c0_i32_7 = arith.constant 0 : i32
    %10 = arith.cmpi eq, %arg2, %c0_i32_7 : i32
    %11 = arith.extui %10 : i1 to i32
    %c0_i32_8 = arith.constant 0 : i32
    %12 = arith.cmpi ne, %11, %c0_i32_8 : i32
    scf.if %12 {
      %c0_9 = arith.constant 0 : index
      %c0_10 = arith.constant 0 : index
      %c0_11 = arith.constant 0 : index
      %13 = vector.load %arg6[%c0_9, %c0_10, %c0_11] : memref<1x8x216xf32, #tpu.memory_space<vmem>>, vector<1x8x216xf32>
      %14 = vector.shape_cast %13 : vector<1x8x216xf32> to vector<8x216xf32>
      %c0_12 = arith.constant 0 : index
      %c0_13 = arith.constant 0 : index
      %15 = vector.load %arg5[%c0_12, %c0_13] : memref<8x1xf32, #tpu.memory_space<vmem>>, vector<8x1xf32>
      %16 = vector.broadcast %15 : vector<8x1xf32> to vector<8x216xf32>
      %17 = arith.addf %14, %16 : vector<8x216xf32>
      %cst_14 = arith.constant -1.000000e+00 : f32
      %18 = vector.broadcast %cst_14 : f32 to vector<8x216xf32>
      %19 = arith.maximumf %17, %18 : vector<8x216xf32>
      %cst_15 = arith.constant 5.000000e-01 : f32
      %20 = vector.broadcast %cst_15 : f32 to vector<8x216xf32>
      %21 = arith.mulf %19, %20 : vector<8x216xf32>
      %c0_16 = arith.constant 0 : index
      %c0_17 = arith.constant 0 : index
      %c0_18 = arith.constant 0 : index
      %22 = vector.load %arg6[%c0_16, %c0_17, %c0_18] : memref<1x8x216xf32, #tpu.memory_space<vmem>>, vector<1x8x216xf32>
      %23 = vector.shape_cast %22 : vector<1x8x216xf32> to vector<8x216xf32>
      %24 = vector.shape_cast %21 : vector<8x216xf32> to vector<1x8x216xf32>
      tpu.vector_store %arg6[%c0_16, %c0_17, %c0_18], %24 {strides = array<i32>} : memref<1x8x216xf32, #tpu.memory_space<vmem>>, vector<1x8x216xf32>,
    } else {
    }
    return
  }
  func.func @transform_0(%arg0: i32, %arg1: i32, %arg2: i32) -> (i32, i32) {
    %c0_i32 = arith.constant 0 : i32
    %c0_i32_0 = arith.constant 0 : i32
    return %c0_i32, %arg2 : i32, i32
  }
  func.func @transform_1(%arg0: i32, %arg1: i32, %arg2: i32) -> (i32, i32, i32) {
    %c0_i32 = arith.constant 0 : i32
    return %arg0, %arg2, %arg1 : i32, i32, i32
  }
  func.func @transform_2(%arg0: i32, %arg1: i32, %arg2: i32) -> (i32, i32) {
    %c0_i32 = arith.constant 0 : i32
    %c0_i32_0 = arith.constant 0 : i32
    %c0_i32_1 = arith.constant 0 : i32
    return %c0_i32, %c0_i32_0 : i32, i32
  }
  func.func @transform_3(%arg0: i32, %arg1: i32, %arg2: i32) -> (i32, i32, i32) {
    %c0_i32 = arith.constant 0 : i32
    %c0_i32_0 = arith.constant 0 : i32
    return %arg0, %c0_i32, %arg1 : i32, i32, i32
  }
}

</mosaic_0001>

<bundles_post_ra>
// kernel: conv_transpose3d_clamp_div.8
= control target key start
LH: loop header
LB: loop body
LE: loop exit
PB: predicated region body
PF: predicated region fallthrough
CT: control target
= control target key end

     0   :  { %s559_s12 = smov 0   ;;  %s561_s13 = smov 0   ;;  %s598_s0 = inlined_call_operand.vmem [shape: f32[8,32], index: 0, kind: input, shape index: {}]   ;;  %s599_s1 = inlined_call_operand.vmem [shape: f32[2,32,125], index: 1, kind: input, shape index: {}]   ;;  %s600_s2 = inlined_call_operand.vmem [shape: f32[8,1], index: 2, kind: input, shape index: {}]   ;;  %s601_s3 = inlined_call_operand.vmem [shape: f32[2,8,125], index: 3, kind: output, shape index: {}]  }
   0x1   :  { %s563_s14 = smov 0  }
   0x2 LB: > { %s32_s15 = sadd.s32 1, %s529_s13  ;;  %p452_p0 = scmp.ge.s32.totalorder %s533_s14, 1  ;;  %s533_s14 = sphi %s563_s14, %s13_s14   ;;  %s529_s13 = sphi %s561_s13, %s603_s13   ;;  %s525_s12 = sphi %s559_s12, %s602_s12  }
   0x3   : > { %p34_p1 = scmp.ge.s32.totalorder %s32_s15, 2  ;;  %p179_p2 = scmp.lt.s32.totalorder %s533_s14, 3 }
   0x5   : > { %s605_s15 = smov (%p34_p1, %s32_s15), 0  ;;  %p180_p3 = pnand %p452_p0, %p179_p2 }
   0x6   : > { %p221_p4 = scmp.lt.s32.totalorder (!%p180_p3), %s525_s12, 1  ;;  %v535_v0 = vmov (!%p180_p3), 0.0|0.0   ;;  %vm536_vm0 = vmmov (!%p180_p3), 0   ;;  %v537_v1 = vmov (!%p180_p3), 0.0   ;;  %v337_v2 = vld [vmem:[%s600_s2] sm:$0xff] (!%p180_p3)  ;;  %v538_v3 = vmov (!%p180_p3), 0  }
   0x7   : > { %183 = sbr.rel (%p180_p3) target bundleno = 254 (0xfe), region = 32  ;;  %476 = vmatprep.subr.bf16.mxu0 (!%p180_p3), %v535_v0  ;;  %473 = vmatprep.mubr.msk.f32.mxu0 (!%p180_p3), %vm536_vm0, %v537_v1  ;;  %v240_v10 = vld [vmem:[%s598_s0] sm:$0xff] (!%p180_p3)  ;;  %vm245_vm1 = vcmask (!%p180_p3), 261120   ;;  %vm323_vm2 = vcmask (!%p180_p3), 1022976  }
   0x8   : > { %510 = vset.pattern.permute.xlu0 (!%p180_p3), %v538_v3 }
   0x9   : > { %340 = vperm.xlu0 (!%p180_p3), %510, %v337_v2  }
   0xe   : > { %s607_s12 = smov (!%p221_p4, %s525_s12), 1 }
   0xf   : > { %s459_s18 = sshll.u32 %s607_s12, 5  ;;  %s455_s24 = sshll.u32 %s607_s12, 3 }
  0x10   : > { %s231_s21 = scalar_lea.vmem %s599_s1, %s459_s18  ;;  %s239_s27 = scalar_lea.vmem %s601_s3, %s455_s24 }
  0x11   : > { %v241_v4 = vld [vmem:[%s231_s21] sm:$0xff]  ;;  %v242_v5 = vld [vmem:[%s231_s21 + $0x8] sm:$0xff]  ;;  %v243_v6 = vld [vmem:[%s231_s21 + $0x10] sm:$0xff] }
  0x12   : > { %v477_v7 = vpack.c.bf16 %v242_v5, %v241_v4  ;;  %v244_v8 = vld [vmem:[%s231_s21 + $0x18] sm:$0xff] }
  0x13   : > { %v480_v9 = vpack.c.bf16 %v244_v8, %v243_v6 }
  0x14   : > { %478 = vmatpush3.bf16.msra.mxu0 %v477_v7 }
  0x15   : > { %479 = vmatprep.subr.bf16.mxu0 %v535_v0 }
  0x18   : > { %481 = vmatpush3.bf16.msra.mxu0 %v480_v9 }
  0x1b   : > { %474 = vmatmul.mubr.msk.f32.vlgmr.msra.gmra.mrb[0].mxu0 %vm245_vm1, %v240_v10 }
  0x88   : > { %v341_v13 = vpop.permute.xlu0 %340 }
  0xee   : > { %v315_v11 = vpop.f32.mrb[0].mxu0 }
  0xef   : > { %324 = vst.msk [vmem:[%s239_s27] sm:$0xff] %vm323_vm2, %v315_v11  ;;  %v475_v12 = vpop.f32.mrb[1].mxu0 }
  0xf6   : > { %v336_v14 = vld [vmem:[%s239_s27] sm:$0xff] }
  0xf7   : > { %v343_v15 = vadd.f32 %v341_v13, %v336_v14 }
  0xf9   : > { %v344_v16 = vmax.f32 %v343_v15, -1.0 }
  0xfb   : > { %v345_v17 = vmul.f32 0.5, %v344_v16 }
  0xfd   : > { %347 = vst.msk [vmem:[%s239_s27] sm:$0xff] %vm323_vm2, %v345_v17 }
  0xfe PF: > { %s13_s14 = sadd.s32 1, %s533_s14   ;;  %s602_s12 = smov %s529_s13 }
  0xff   : > { %p10_p5 = scmp.ge.s32.totalorder %s13_s14, 4   ;;  %s603_s13 = smov %s605_s15 }
 0x101   :  { %12 = sbr.rel (!%p10_p5) target bundleno = 2 (0x2), region = 77 }

// kernel: conv_transpose3d_clamp_div.9
= control target key start
LH: loop header
LB: loop body
LE: loop exit
PB: predicated region body
PF: predicated region fallthrough
CT: control target
= control target key end

     0   :  { %s574_s12 = smov 0   ;;  %s576_s13 = smov 0   ;;  %s613_s0 = inlined_call_operand.vmem [shape: f32[8,16], index: 0, kind: input, shape index: {}]   ;;  %s614_s1 = inlined_call_operand.vmem [shape: f32[2,16,150], index: 1, kind: input, shape index: {}]   ;;  %s615_s2 = inlined_call_operand.vmem [shape: f32[8,1], index: 2, kind: input, shape index: {}]   ;;  %s616_s3 = inlined_call_operand.vmem [shape: f32[2,8,150], index: 3, kind: output, shape index: {}]  }
   0x1   :  { %s578_s14 = smov 0  }
   0x2 LB: > { %s32_s15 = sadd.s32 1, %s546_s13  ;;  %p487_p0 = scmp.ge.s32.totalorder %s550_s14, 1  ;;  %s550_s14 = sphi %s578_s14, %s13_s14   ;;  %s546_s13 = sphi %s576_s13, %s618_s13   ;;  %s542_s12 = sphi %s574_s12, %s617_s12  }
   0x3   : > { %p34_p1 = scmp.ge.s32.totalorder %s32_s15, 2  ;;  %p182_p2 = scmp.lt.s32.totalorder %s550_s14, 3 }
   0x5   : > { %s620_s15 = smov (%p34_p1, %s32_s15), 0  ;;  %p183_p3 = pnand %p487_p0, %p182_p2 }
   0x6   : > { %p229_p4 = scmp.lt.s32.totalorder (!%p183_p3), %s542_s12, 1  ;;  %v356_v0 = vld [vmem:[%s615_s2] sm:$0xff] (!%p183_p3)  ;;  %v552_v1 = vmov (!%p183_p3), 0.0   ;;  %v553_v2 = vmov (!%p183_p3), 0   ;;  %vm258_vm0 = vcmask (!%p183_p3), 130048   ;;  %vm338_vm1 = vcmask (!%p183_p3), 179200  }
   0x7   : > { %186 = sbr.rel (%p183_p3) target bundleno = 252 (0xfc), region = 32  ;;  %326 = vmatprep.mubr.f32.mxu0 (!%p183_p3), %v552_v1  ;;  %527 = vset.pattern.permute.xlu0 (!%p183_p3), %v553_v2  ;;  %v253_v9 = vld [vmem:[%s613_s0] sm:$0xff] (!%p183_p3) }
   0x8   : > { %359 = vperm.xlu0 (!%p183_p3), %527, %v356_v0  }
   0xe   : > { %s622_s12 = smov (!%p229_p4, %s542_s12), 1 }
   0xf   : > { %s495_s18 = sshll.u32 %s622_s12, 5  ;;  %s496_s24 = sshll.u32 %s622_s12, 4 }
  0x10   : > { %s240_s21 = scalar_lea.vmem %s614_s1, %s495_s18  ;;  %s251_s27 = scalar_lea.vmem %s616_s3, %s496_s24 }
  0x11   : > { %v255_v3 = vld [vmem:[%s240_s21 + $0x8] sm:$0xff]  ;;  %v257_v4 = vld [vmem:[%s240_s21 + $0x18] sm:$0xff]  ;;  %v254_v5 = vld [vmem:[%s240_s21] sm:$0xff] }
  0x12   : > { %v497_v6 = vpack.c.bf16 %v257_v4, %v255_v3  ;;  %v256_v7 = vld [vmem:[%s240_s21 + $0x10] sm:$0xff] }
  0x13   : > { %v499_v8 = vpack.c.bf16 %v256_v7, %v254_v5 }
  0x14   : > { %498 = vmatprep.subr.bf16.mxu0 %v497_v6 }
  0x15   : > { %500 = vmatpush1.bf16.msra.mxu0 %v499_v8 }
  0x18   : > { %492 = vmatmul.mubr.msk.f32.vlgmr.msra.gmra.mrb[0].mxu0 %vm258_vm0, %v253_v9 }
  0x87   : > { %v360_v10 = vpop.permute.xlu0 %359 }
  0xeb   : > { %v328_v11 = vpop.f32.mrb[0].mxu0 }
  0xec   : > { %v330_v12 = vpop.f32.mrb[1].mxu0  ;;  %v362_v13 = vadd.f32 %v360_v10, %v328_v11 }
  0xed   : > { %339 = vst.msk [vmem:[%s251_s27 + $0x8] sm:$0xff] %vm338_vm1, %v330_v12 }
  0xee   : > { %v364_v14 = vmax.f32 %v362_v13, -1.0 }
  0xf0   : > { %v366_v15 = vmul.f32 0.5, %v364_v14 }
  0xf2   : > { %368 = vst [vmem:[%s251_s27] sm:$0xff] %v366_v15 }
  0xf4   : > { %v355_v16 = vld [vmem:[%s251_s27 + $0x8] sm:$0xff] }
  0xf5   : > { %v363_v17 = vadd.f32 %v360_v10, %v355_v16 }
  0xf7   : > { %v365_v18 = vmax.f32 %v363_v17, -1.0 }
  0xf9   : > { %v367_v19 = vmul.f32 0.5, %v365_v18 }
  0xfb   : > { %370 = vst.msk [vmem:[%s251_s27 + $0x8] sm:$0xff] %vm338_vm1, %v367_v19 }
  0xfc PF: > { %s13_s14 = sadd.s32 1, %s550_s14   ;;  %s617_s12 = smov %s546_s13 }
  0xfd   : > { %p10_p5 = scmp.ge.s32.totalorder %s13_s14, 4   ;;  %s618_s13 = smov %s620_s15 }
  0xff   :  { %12 = sbr.rel (!%p10_p5) target bundleno = 2 (0x2), region = 77 }

// kernel: conv_transpose3d_clamp_div.11
= control target key start
LH: loop header
LB: loop body
LE: loop exit
PB: predicated region body
PF: predicated region fallthrough
CT: control target
= control target key end

     0   :  { %s563_s12 = smov 0   ;;  %s565_s13 = smov 0   ;;  %s602_s0 = inlined_call_operand.vmem [shape: f32[8,8], index: 0, kind: input, shape index: {}]   ;;  %s603_s1 = inlined_call_operand.vmem [shape: f32[2,8,180], index: 1, kind: input, shape index: {}]   ;;  %s604_s2 = inlined_call_operand.vmem [shape: f32[8,1], index: 2, kind: input, shape index: {}]   ;;  %s605_s3 = inlined_call_operand.vmem [shape: f32[2,8,180], index: 3, kind: output, shape index: {}]  }
   0x1   :  { %s567_s14 = smov 0  }
   0x2 LB: > { %s32_s15 = sadd.s32 1, %s535_s13  ;;  %p480_p0 = scmp.ge.s32.totalorder %s539_s14, 1  ;;  %s539_s14 = sphi %s567_s14, %s13_s14   ;;  %s535_s13 = sphi %s565_s13, %s607_s13   ;;  %s531_s12 = sphi %s563_s12, %s606_s12  }
   0x3   : > { %p34_p1 = scmp.ge.s32.totalorder %s32_s15, 2  ;;  %p180_p2 = scmp.lt.s32.totalorder %s539_s14, 3 }
   0x5   : > { %s609_s15 = smov (%p34_p1, %s32_s15), 0  ;;  %p181_p3 = pnand %p480_p0, %p180_p2 }
   0x6   : > { %p225_p4 = scmp.lt.s32.totalorder (!%p181_p3), %s531_s12, 1  ;;  %v349_v0 = vld [vmem:[%s604_s2] sm:$0xff] (!%p181_p3)  ;;  %v541_v1 = vmov (!%p181_p3), 0.0   ;;  %v542_v2 = vmov (!%p181_p3), 0   ;;  %vm251_vm0 = vcmask (!%p181_p3), 64512   ;;  %vm331_vm1 = vcmask (!%p181_p3), 424960  }
   0x7   : > { %184 = sbr.rel (%p181_p3) target bundleno = 248 (0xf8), region = 32  ;;  %319 = vmatprep.mubr.f32.mxu0 (!%p181_p3), %v541_v1  ;;  %516 = vset.pattern.permute.xlu0 (!%p181_p3), %v542_v2  ;;  %v248_v5 = vld [vmem:[%s602_s0] sm:$0xff] (!%p181_p3) }
   0x8   : > { %352 = vperm.xlu0 (!%p181_p3), %516, %v349_v0  }
   0xe   : > { %s611_s12 = smov (!%p225_p4, %s531_s12), 1 }
   0xf   : > { %s488_s18 = sshll.u32 %s611_s12, 4 }
  0x10   : > { %s236_s21 = scalar_lea.vmem %s603_s1, %s488_s18  ;;  %s246_s26 = scalar_lea.vmem %s605_s3, %s488_s18 }
  0x11   : > { %v250_v3 = vld [vmem:[%s236_s21 + $0x8] sm:$0xff]  ;;  %v249_v4 = vld [vmem:[%s236_s21] sm:$0xff] }
  0x12   : > { %255 = vmatprep.subr.mxu0 %v250_v3 }
  0x13   : > { %256 = vmatpush1.msra.mxu0 %v249_v4 }
  0x14   : > { %485 = vmatmul.mubr.msk.f32.vlgmr.msra.gmra.mrb[0].mxu0 %vm251_vm0, %v248_v5 }
  0x87   : > { %v353_v6 = vpop.permute.xlu0 %352 }
  0xe7   : > { %v321_v7 = vpop.f32.mrb[0].mxu0 }
  0xe8   : > { %v323_v8 = vpop.f32.mrb[1].mxu0  ;;  %v355_v9 = vadd.f32 %v353_v6, %v321_v7 }
  0xe9   : > { %332 = vst.msk [vmem:[%s246_s26 + $0x8] sm:$0xff] %vm331_vm1, %v323_v8 }
  0xea   : > { %v357_v10 = vmax.f32 %v355_v9, -1.0 }
  0xec   : > { %v359_v11 = vmul.f32 0.5, %v357_v10 }
  0xee   : > { %361 = vst [vmem:[%s246_s26] sm:$0xff] %v359_v11 }
  0xf0   : > { %v348_v12 = vld [vmem:[%s246_s26 + $0x8] sm:$0xff] }
  0xf1   : > { %v356_v13 = vadd.f32 %v353_v6, %v348_v12 }
  0xf3   : > { %v358_v14 = vmax.f32 %v356_v13, -1.0 }
  0xf5   : > { %v360_v15 = vmul.f32 0.5, %v358_v14 }
  0xf7   : > { %363 = vst.msk [vmem:[%s246_s26 + $0x8] sm:$0xff] %vm331_vm1, %v360_v15 }
  0xf8 PF: > { %s13_s14 = sadd.s32 1, %s539_s14   ;;  %s606_s12 = smov %s535_s13 }
  0xf9   : > { %p10_p5 = scmp.ge.s32.totalorder %s13_s14, 4   ;;  %s607_s13 = smov %s609_s15 }
  0xfb   :  { %12 = sbr.rel (!%p10_p5) target bundleno = 2 (0x2), region = 77 }

// kernel: conv_transpose3d_clamp_div.15
= control target key start
LH: loop header
LB: loop body
LE: loop exit
PB: predicated region body
PF: predicated region fallthrough
CT: control target
= control target key end

     0   :  { %s572_s12 = smov 0   ;;  %s574_s13 = smov 0   ;;  %s611_s0 = inlined_call_operand.vmem [shape: f32[8,4], index: 0, kind: input, shape index: {}]   ;;  %s612_s1 = inlined_call_operand.vmem [shape: f32[2,4,216], index: 1, kind: input, shape index: {}]   ;;  %s613_s2 = inlined_call_operand.vmem [shape: f32[8,1], index: 2, kind: input, shape index: {}]   ;;  %s614_s3 = inlined_call_operand.vmem [shape: f32[2,8,216], index: 3, kind: output, shape index: {}]  }
   0x1   :  { %s576_s14 = smov 0  }
   0x2 LB: > { %s32_s15 = sadd.s32 1, %s544_s13  ;;  %p486_p0 = scmp.ge.s32.totalorder %s548_s14, 1  ;;  %s548_s14 = sphi %s576_s14, %s13_s14   ;;  %s544_s13 = sphi %s574_s13, %s616_s13   ;;  %s540_s12 = sphi %s572_s12, %s615_s12  }
   0x3   : > { %p34_p1 = scmp.ge.s32.totalorder %s32_s15, 2  ;;  %p180_p2 = scmp.lt.s32.totalorder %s548_s14, 3 }
   0x5   : > { %s618_s15 = smov (%p34_p1, %s32_s15), 0  ;;  %p181_p3 = pnand %p486_p0, %p180_p2 }
   0x6   : > { %p225_p4 = scmp.lt.s32.totalorder (!%p181_p3), %s540_s12, 1  ;;  %v550_v0 = vmov (!%p181_p3), 0.0   ;;  %v551_v1 = vmov (!%p181_p3), 0   ;;  %v355_v2 = vld [vmem:[%s613_s2] sm:$0xff] (!%p181_p3)  ;;  %vm256_vm0 = vcmask (!%p181_p3), 1043456   ;;  %vm252_vm1 = vcmask (!%p181_p3), 31744  }
   0x7   : > { %184 = sbr.rel (%p181_p3) target bundleno = 250 (0xfa), region = 32  ;;  %325 = vmatprep.mubr.f32.mxu0 (!%p181_p3), %v550_v0  ;;  %524 = vset.pattern.permute.xlu0 (!%p181_p3), %v551_v1  ;;  %v248_v5 = vld [vmem:[%s611_s0] sm:$0xff] (!%p181_p3)  ;;  %vm337_vm2 = vcmask (!%p181_p3), 719872  }
   0x8   : > { %358 = vperm.xlu0 (!%p181_p3), %524, %v355_v2  }
   0xe   : > { %s620_s12 = smov (!%p225_p4, %s540_s12), 1 }
   0xf   : > { %s496_s18 = sshll.u32 %s620_s12, 3  ;;  %s497_s24 = sshll.u32 %s620_s12, 4 }
  0x10   : > { %s236_s21 = scalar_lea.vmem %s612_s1, %s496_s18  ;;  %s246_s27 = scalar_lea.vmem %s614_s3, %s497_s24 }
  0x11   : > { %v249_v3 = vld [vmem:[%s236_s21] sm:$0xff] }
  0x12   : > { %v251_v4 = vcombine.high %v249_v3, %v249_v3 }
  0x14   : > { %491 = vmatprep.subr.msk.mxu0 %vm256_vm0, %v251_v4 }
  0x15   : > { %492 = vmatpush1.msk.msra.mxu0 %vm256_vm0, %v249_v3 }
  0x16   : > { %493 = vmatmul.mubr.msk.f32.vlgmr.msra.gmra.mrb[0].mxu0 %vm252_vm1, %v248_v5 }
  0x87   : > { %v359_v6 = vpop.permute.xlu0 %358 }
  0xe9   : > { %v327_v7 = vpop.f32.mrb[0].mxu0 }
  0xea   : > { %v329_v8 = vpop.f32.mrb[1].mxu0  ;;  %v361_v9 = vadd.f32 %v359_v6, %v327_v7 }
  0xeb   : > { %338 = vst.msk [vmem:[%s246_s27 + $0x8] sm:$0xff] %vm337_vm2, %v329_v8 }
  0xec   : > { %v363_v10 = vmax.f32 %v361_v9, -1.0 }
  0xee   : > { %v365_v11 = vmul.f32 0.5, %v363_v10 }
  0xf0   : > { %367 = vst [vmem:[%s246_s27] sm:$0xff] %v365_v11 }
  0xf2   : > { %v354_v12 = vld [vmem:[%s246_s27 + $0x8] sm:$0xff] }
  0xf3   : > { %v362_v13 = vadd.f32 %v359_v6, %v354_v12 }
  0xf5   : > { %v364_v14 = vmax.f32 %v362_v13, -1.0 }
  0xf7   : > { %v366_v15 = vmul.f32 0.5, %v364_v14 }
  0xf9   : > { %369 = vst.msk [vmem:[%s246_s27 + $0x8] sm:$0xff] %vm337_vm2, %v366_v15 }
  0xfa PF: > { %s13_s14 = sadd.s32 1, %s548_s14   ;;  %s615_s12 = smov %s544_s13 }
  0xfb   : > { %p10_p5 = scmp.ge.s32.totalorder %s13_s14, 4   ;;  %s616_s13 = smov %s618_s15 }
  0xfd   :  { %12 = sbr.rel (!%p10_p5) target bundleno = 2 (0x2), region = 77 }

</bundles_post_ra>
